<compile_context>
chip_gen: v5e
topology: v5e:2x2
jax: 0.10.0
libtpu: 0.0.40
codegen_flags: <defaults>
</compile_context>

<pallas_src>
import functools

import jax
import jax.numpy as jnp
from jax.experimental import pallas as pl
from jax.experimental.pallas import tpu as pltpu

# Deterministic "module init" (matches BinaryFocalLoss(gamma=2, alpha=0.25)).
GAMMA = 2.0
ALPHA = 0.25
SIZE_AVERAGE = True

_LANES = 128
_SUBLANES = 8
_MAX_TILE_ROWS = 1024   # 1024x128 f32 = 512 KiB per input block; ~2 MiB double-buffered.
_NUM_CORES = 2          # v7x has 2 TensorCores; extra axis is a cheap no-op on v5e/v6e.


def _pow_static(base, gamma):
    """Static-exponent power. Integer exponents -> repeated multiply (VPU only)."""
    g = float(gamma)
    if g == 0.0:
        return jnp.ones_like(base)
    if g.is_integer() and 1.0 <= g <= 8.0:
        out = base
        for _ in range(int(g) - 1):
            out = out * base
        return out
    # Non-integer gamma: pow lowers to exp/log on the EUP; clamp base to avoid NaN
    # from (1 - pt) rounding a ulp below zero.
    return jnp.maximum(base, 0.0) ** g


def _focal_kernel(x_ref, t_ref, o_ref, *, gamma, alpha, n_rows, tile_rows,
                  tiles_per_core):
    """Elementwise binary focal loss, accumulated into a resident vector block."""
    core = pl.program_id(0)
    step = pl.program_id(1)

    @pl.when(step == 0)
    def _():
        o_ref[...] = jnp.zeros_like(o_ref)

    x = x_ref[...].astype(jnp.float32)
    t = t_ref[...].astype(jnp.float32)

    # Mask rows past the logical end of the array (partial last tile and
    # clamped/duplicated tiles of the megacore split). Masked elements are set to
    # (x=1, t=1): pt = 1, log(pt) = 0 -> exactly zero loss contribution.
    row_in_tile = jax.lax.broadcasted_iota(jnp.int32, x.shape, 0)
    global_row = (core * tiles_per_core + step) * tile_rows + row_in_tile
    valid = global_row < n_rows
    x = jnp.where(valid, x, 1.0)
    t = jnp.where(valid, t, 1.0)

    pt = x * t + (1.0 - x) * (1.0 - t)
    logpt = jnp.log(pt)
    at = (1.0 - alpha) * t + alpha * (1.0 - t)
    logpt = logpt * at
    focal = _pow_static(1.0 - pt, gamma)
    loss = -focal * logpt

    # Pure VPU vector accumulate; the resident output block is written back to HBM
    # once per core when the parallel index advances / the grid ends.
    o_ref[...] += loss


def _pytorch_style_flatten(x, target):
    """Reproduce the view/transpose glue from BinaryFocalLoss.forward (no casts)."""
    if x.ndim == 1:
        x = x[:, None]
    if target.ndim == 1:
        target = target[:, None]
    if x.ndim > 2:
        n, c = x.shape[0], x.shape[1]
        x = x.reshape(n, c, -1)          # (N, C, H*W)
        x = jnp.transpose(x, (0, 2, 1))  # (N, H*W, C)
        x = x.reshape(-1, c)             # (N*H*W, C)
    # PyTorch relies on broadcasting between input and target; do it explicitly.
    shape = jnp.broadcast_shapes(x.shape, target.shape)
    x = jnp.broadcast_to(x, shape)
    target = jnp.broadcast_to(target, shape)
    return x, target


@functools.partial(jax.jit, static_argnames=("gamma", "alpha", "size_average"))
def binary_focal_loss(x, target, *, gamma=GAMMA, alpha=ALPHA, size_average=SIZE_AVERAGE):
    x2d, t2d = _pytorch_style_flatten(x, target)
    n_valid = x2d.size

    xf = x2d.reshape(-1)
    tf = t2d.reshape(-1)

    # Pad at most the <128-element lane remainder with (x=1, t=1) -> zero loss.
    rem = (-n_valid) % _LANES
    if rem:
        xf = jnp.pad(xf, (0, rem), constant_values=1)
        tf = jnp.pad(tf, (0, rem), constant_values=1)

    n_rows = (n_valid + rem) // _LANES
    xf = xf.reshape(n_rows, _LANES)
    tf = tf.reshape(n_rows, _LANES)

    tile_rows = min(_MAX_TILE_ROWS, pl.cdiv(n_rows, _SUBLANES) * _SUBLANES)
    n_tiles = pl.cdiv(n_rows, tile_rows)
    tiles_per_core = pl.cdiv(n_tiles, _NUM_CORES)

    kernel = functools.partial(
        _focal_kernel,
        gamma=gamma,
        alpha=alpha,
        n_rows=n_rows,
        tile_rows=tile_rows,
        tiles_per_core=tiles_per_core,
    )

    def in_map(p, i):
        # Clamp to the last real tile; the in-kernel row mask zeroes any duplicate
        # contribution, so core splits need not divide the tile count evenly.
        blk = jnp.minimum(p * tiles_per_core + i, n_tiles - 1)
        return (blk, 0)

    partials = pl.pallas_call(
        kernel,
        out_shape=jax.ShapeDtypeStruct((_NUM_CORES * tile_rows, _LANES), jnp.float32),
        grid_spec=pltpu.PrefetchScalarGridSpec(
            num_scalar_prefetch=0,
            grid=(_NUM_CORES, tiles_per_core),
            in_specs=[
                pl.BlockSpec((tile_rows, _LANES), in_map),
                pl.BlockSpec((tile_rows, _LANES), in_map),
            ],
            out_specs=pl.BlockSpec((tile_rows, _LANES), lambda p, i: (p, 0)),
        ),
        compiler_params=pltpu.CompilerParams(
            dimension_semantics=("parallel", "arbitrary"),
        ),
    )(xf, tf)

    total = jnp.sum(partials)
    if size_average:
        # TODO(synk): matches PyTorch mean(); an empty input yields NaN here too.
        total = total / jnp.float32(n_valid)
    return total


def _reference(x, target, gamma=GAMMA, alpha=ALPHA, size_average=SIZE_AVERAGE):
    x2d, t2d = _pytorch_style_flatten(x, target)
    x2d = x2d.astype(jnp.float32)
    t2d = t2d.astype(jnp.float32)
    pt = x2d * t2d + (1.0 - x2d) * (1.0 - t2d)
    logpt = jnp.log(pt)
    at = (1.0 - alpha) * t2d + alpha * (1.0 - t2d)
    loss = -1.0 * (1.0 - pt) ** gamma * (logpt * at)
    return jnp.mean(loss) if size_average else jnp.sum(loss)


if __name__ == "__main__":
    key = jax.random.PRNGKey(0)
    k1, k2, k3, k4 = jax.random.split(key, 4)

    # 2-D case: predicted probabilities + binary targets, shape (rows, channels).
    probs = jax.nn.sigmoid(jax.random.normal(k1, (512, 4), dtype=jnp.float32))
    target = (jax.random.uniform(k2, (512, 4)) > 0.5).astype(jnp.float32)
    loss = jax.block_until_ready(binary_focal_loss(probs, target))
    ref = _reference(probs, target)
    assert jnp.allclose(loss, ref, rtol=1e-5, atol=1e-6), (loss, ref)

    # 4-D case (N, C, H, W): exercises the view/transpose glue of forward();
    # target must broadcast against the flattened (N*H*W, C) input, as in PyTorch.
    probs4 = jax.nn.sigmoid(jax.random.normal(k3, (2, 4, 16, 16), dtype=jnp.float32))
    target4 = (jax.random.uniform(k4, (2 * 16 * 16, 4)) > 0.5).astype(jnp.float32)
    loss4 = jax.block_until_ready(binary_focal_loss(probs4, target4))
    ref4 = _reference(probs4, target4)
    assert jnp.allclose(loss4, ref4, rtol=1e-5, atol=1e-6), (loss4, ref4)

    # Ragged case: exercises the lane-remainder pad + in-kernel row masking.
    probs_r = jax.nn.sigmoid(jax.random.normal(k1, (37, 5), dtype=jnp.float32))
    target_r = (jax.random.uniform(k2, (37, 5)) > 0.5).astype(jnp.float32)
    loss_r = jax.block_until_ready(binary_focal_loss(probs_r, target_r))
    ref_r = _reference(probs_r, target_r)
    assert jnp.allclose(loss_r, ref_r, rtol=1e-5, atol=1e-6), (loss_r, ref_r)

    print("KERNEL_OK")
</pallas_src>

<mosaic_0001>
module attributes {stable_mosaic.version = 11 : i64} {
  func.func @_focal_kernel(%arg0: i32, %arg1: i32, %arg2: memref<16x128xf32, #tpu.memory_space<vmem>>, %arg3: memref<16x128xf32, #tpu.memory_space<vmem>>, %arg4: memref<16x128xf32, #tpu.memory_space<vmem>>) attributes {dimension_semantics = [#tpu.dimension_semantics<parallel>, #tpu.dimension_semantics<arbitrary>], iteration_bounds = array<i64: 2, 1>, scalar_prefetch = 0 : i64, scratch_operands = 0 : i64, tpu.core_type = #tpu.core_type<tc>, window_params = [{transform_indices = @transform_0, window_bounds = array<i64: 16, 128>}, {transform_indices = @transform_1, window_bounds = array<i64: 16, 128>}, {transform_indices = @transform_2, window_bounds = array<i64: 16, 128>}]} {
    %c0_i32 = arith.constant 0 : i32
    %0 = arith.cmpi eq, %arg1, %c0_i32 : i32
    %1 = arith.extui %0 : i1 to i32
    %c0_i32_0 = arith.constant 0 : i32
    %2 = arith.cmpi ne, %1, %c0_i32_0 : i32
    scf.if %2 {
      %cst_17 = arith.constant 0.000000e+00 : f32
      %42 = vector.broadcast %cst_17 : f32 to vector<16x128xf32>
      %c0_18 = arith.constant 0 : index
      %c0_19 = arith.constant 0 : index
      %43 = vector.load %arg4[%c0_18, %c0_19] : memref<16x128xf32, #tpu.memory_space<vmem>>, vector<16x128xf32>
      tpu.vector_store %arg4[%c0_18, %c0_19], %42 {strides = array<i32>} : memref<16x128xf32, #tpu.memory_space<vmem>>, vector<16x128xf32>,
    } else {
    }
    %c0 = arith.constant 0 : index
    %c0_1 = arith.constant 0 : index
    %3 = vector.load %arg2[%c0, %c0_1] : memref<16x128xf32, #tpu.memory_space<vmem>>, vector<16x128xf32>
    %c0_2 = arith.constant 0 : index
    %c0_3 = arith.constant 0 : index
    %4 = vector.load %arg3[%c0_2, %c0_3] : memref<16x128xf32, #tpu.memory_space<vmem>>, vector<16x128xf32>
    %5 = tpu.iota {dimensions = array<i32: 0>} : vector<16x128xi32>
    %c1_i32 = arith.constant 1 : i32
    %6 = arith.muli %arg0, %c1_i32 : i32
    %7 = arith.addi %6, %arg1 : i32
    %c16_i32 = arith.constant 16 : i32
    %8 = arith.muli %7, %c16_i32 : i32
    %9 = vector.broadcast %8 : i32 to vector<16x128xi32>
    %10 = arith.addi %9, %5 : vector<16x128xi32>
    %c16_i32_4 = arith.constant 16 : i32
    %11 = vector.broadcast %c16_i32_4 : i32 to vector<16x128xi32>
    %12 = arith.cmpi slt, %10, %11 : vector<16x128xi32>
    %cst = arith.constant 1.000000e+00 : f32
    %13 = vector.broadcast %cst : f32 to vector<16x128xf32>
    %14 = arith.select %12, %3, %13 : vector<16x128xi1>, vector<16x128xf32>
    %cst_5 = arith.constant 1.000000e+00 : f32
    %15 = vector.broadcast %cst_5 : f32 to vector<16x128xf32>
    %16 = arith.select %12, %4, %15 : vector<16x128xi1>, vector<16x128xf32>
    %17 = arith.mulf %14, %16 : vector<16x128xf32>
    %cst_6 = arith.constant 1.000000e+00 : f32
    %18 = vector.broadcast %cst_6 : f32 to vector<16x128xf32>
    %19 = arith.subf %18, %14 : vector<16x128xf32>
    %cst_7 = arith.constant 1.000000e+00 : f32
    %20 = vector.broadcast %cst_7 : f32 to vector<16x128xf32>
    %21 = arith.subf %20, %16 : vector<16x128xf32>
    %22 = arith.mulf %19, %21 : vector<16x128xf32>
    %23 = arith.addf %17, %22 : vector<16x128xf32>
    %24 = math.log %23 : vector<16x128xf32>
    %cst_8 = arith.constant 7.500000e-01 : f32
    %25 = vector.broadcast %cst_8 : f32 to vector<16x128xf32>
    %26 = arith.mulf %25, %16 : vector<16x128xf32>
    %cst_9 = arith.constant 1.000000e+00 : f32
    %27 = vector.broadcast %cst_9 : f32 to vector<16x128xf32>
    %28 = arith.subf %27, %16 : vector<16x128xf32>
    %cst_10 = arith.constant 2.500000e-01 : f32
    %29 = vector.broadcast %cst_10 : f32 to vector<16x128xf32>
    %30 = arith.mulf %29, %28 : vector<16x128xf32>
    %31 = arith.addf %26, %30 : vector<16x128xf32>
    %32 = arith.mulf %24, %31 : vector<16x128xf32>
    %cst_11 = arith.constant 1.000000e+00 : f32
    %33 = vector.broadcast %cst_11 : f32 to vector<16x128xf32>
    %34 = arith.subf %33, %23 : vector<16x128xf32>
    %35 = arith.mulf %34, %34 : vector<16x128xf32>
    %cst_12 = arith.constant 0.000000e+00 : f32
    %36 = vector.broadcast %cst_12 : f32 to vector<16x128xf32>
    %37 = arith.subf %36, %35 : vector<16x128xf32>
    %38 = arith.mulf %37, %32 : vector<16x128xf32>
    %c0_13 = arith.constant 0 : index
    %c0_14 = arith.constant 0 : index
    %39 = vector.load %arg4[%c0_13, %c0_14] : memref<16x128xf32, #tpu.memory_space<vmem>>, vector<16x128xf32>
    %40 = arith.addf %39, %38 : vector<16x128xf32>
    %c0_15 = arith.constant 0 : index
    %c0_16 = arith.constant 0 : index
    %41 = vector.load %arg4[%c0_15, %c0_16] : memref<16x128xf32, #tpu.memory_space<vmem>>, vector<16x128xf32>
    tpu.vector_store %arg4[%c0_15, %c0_16], %40 {strides = array<i32>} : memref<16x128xf32, #tpu.memory_space<vmem>>, vector<16x128xf32>,
    return
  }
  func.func @transform_0(%arg0: i32, %arg1: i32) -> (i32, i32) {
    %c1_i32 = arith.constant 1 : i32
    %0 = arith.muli %arg0, %c1_i32 : i32
    %1 = arith.addi %0, %arg1 : i32
    %c0_i32 = arith.constant 0 : i32
    %2 = arith.minsi %1, %c0_i32 : i32
    %c0_i32_0 = arith.constant 0 : i32
    %c0_i32_1 = arith.constant 0 : i32
    return %2, %c0_i32_0 : i32, i32
  }
  func.func @transform_1(%arg0: i32, %arg1: i32) -> (i32, i32) {
    %c1_i32 = arith.constant 1 : i32
    %0 = arith.muli %arg0, %c1_i32 : i32
    %1 = arith.addi %0, %arg1 : i32
    %c0_i32 = arith.constant 0 : i32
    %2 = arith.minsi %1, %c0_i32 : i32
    %c0_i32_0 = arith.constant 0 : i32
    %c0_i32_1 = arith.constant 0 : i32
    return %2, %c0_i32_0 : i32, i32
  }
  func.func @transform_2(%arg0: i32, %arg1: i32) -> (i32, i32) {
    %c0_i32 = arith.constant 0 : i32
    %c0_i32_0 = arith.constant 0 : i32
    return %arg0, %c0_i32 : i32, i32
  }
}

</mosaic_0001>

<bundles_post_ra>
// kernel: binary_focal_loss.1
= control target key start
LH: loop header
LB: loop body
LE: loop exit
PB: predicated region body
PF: predicated region fallthrough
CT: control target
= control target key end

     0   :  { %s443_s9 = smov 0   ;;  %s445_s10 = smov 0   ;;  %s486_s0 = inlined_call_operand.vmem [shape: f32[16,128], index: 0, kind: input, shape index: {}]   ;;  %s487_s1 = inlined_call_operand.vmem [shape: f32[16,128], index: 1, kind: input, shape index: {}]   ;;  %s488_s2 = inlined_call_operand.vmem [shape: f32[32,128], index: 2, kind: output, shape index: {}]  }
   0x1   :  { %s447_s11 = smov 0  }
   0x2 LB: > { %s24_s12 = sadd.s32 1, %s421_s10  ;;  %p364_p0 = scmp.ge.s32.totalorder %s425_s11, 1  ;;  %s425_s11 = sphi %s447_s11, %s12_s11   ;;  %s421_s10 = sphi %s445_s10, %s490_s10   ;;  %s417_s9 = sphi %s443_s9, %s489_s9  }
   0x3   : > { %p26_p1 = scmp.ge.s32.totalorder %s24_s12, 2  ;;  %p160_p2 = scmp.lt.s32.totalorder %s425_s11, 3 }
   0x5   : > { %s492_s12 = smov (%p26_p1, %s24_s12), 0  ;;  %p161_p3 = pnand %p364_p0, %p160_p2 }
   0x6   : > { %s369_s13 = sshll.u32 (!%p161_p3), %s417_s9, 1  ;;  %p194_p4 = scmp.lt.s32.totalorder (!%p161_p3), %s417_s9, 0 }
   0x7   : > { %164 = sbr.rel (%p161_p3) target bundleno = 44 (0x2c), region = 28  ;;  %p218_p5 = scmp.lt.s32.totalorder (!%p161_p3), %s369_s13, 3 }
   0x8   : > { %s371_s14 = sshll.u32 (!%p161_p3), %s417_s9, 4 }
   0xc   : > { %v233_v0 = vlaneseq  ;;  %s494_s9 = smov (!%p194_p4, %s417_s9), 0  ;;  %v238_v2 = vstv %s371_s14  ;;  %s496_s13 = smov (!%p218_p5, %s369_s13), 3  ;;  %v427_v6 = vmov 0.0  }
   0xd   : > { %s365_s15 = sshll.u32 %s494_s9, 1  ;;  %s370_s16 = sshll.u32 %s496_s13, 3 }
   0xe   : > { %v234_v1 = vshrl.u32 %v233_v0, 7  ;;  %p197_p6 = scmp.lt.s32.totalorder %s365_s15, 1  ;;  %s464_s19 = scalar_lea.vmem %s488_s2, %s370_s16 }
   0xf   : > { %227 = vst [vmem:[%s464_s19] sm:$0xff] %v427_v6 }
  0x10   : > { %v235_v3 = vadd.s32 8, %v234_v1  ;;  %v239_v4 = vadd.s32 %v238_v2, %v234_v1  ;;  %s498_s15 = smov (!%p197_p6, %s365_s15), 1  ;;  %228 = vst [vmem:[%s464_s19 + $0x8] sm:$0xff] %v427_v6 }
  0x11   : > { %s366_s20 = sshll.u32 %s498_s15, 3 }
  0x12   : > { %v240_v5 = vadd.s32 %v238_v2, %v235_v3  ;;  %vm241_vm0 = vcmp.lt.s32.totalorder %v239_v4, 16  ;;  %s200_s23 = scalar_lea.vmem %s486_s0, %s366_s20  ;;  %s212_s26 = scalar_lea.vmem %s487_s1, %s366_s20 }
  0x13   : > { %v229_v7 = vld [vmem:[%s200_s23] sm:$0xff]  ;;  %v230_v8 = vld [vmem:[%s200_s23 + $0x8] sm:$0xff] }
  0x14   : > { %vm242_vm1 = vcmp.lt.s32.totalorder %v240_v5, 16  ;;  %v231_v9 = vld [vmem:[%s212_s26] sm:$0xff]  ;;  %v232_v10 = vld [vmem:[%s212_s26 + $0x8] sm:$0xff]  ;;  %v243_v11 = vsel %vm241_vm0, %v229_v7, 1.0 }
  0x15   : > { %v244_v12 = vsel %vm242_vm1, %v230_v8, 1.0  ;;  %v245_v13 = vsel %vm241_vm0, %v231_v9, 1.0  ;;  %v246_v14 = vsel %vm242_vm1, %v232_v10, 1.0  ;;  %v249_v15 = vsub.f32 1.0, %v243_v11 }
  0x16   : > { %v250_v16 = vsub.f32 1.0, %v244_v12  ;;  %v247_v17 = vmul.f32 %v245_v13, %v243_v11  ;;  %v248_v18 = vmul.f32 %v246_v14, %v244_v12  ;;  %v251_v19 = vsub.f32 1.0, %v245_v13  ;;  %v277_v43 = vld [vmem:[%s464_s19] sm:$0xff] }
  0x17   : > { %v252_v20 = vsub.f32 1.0, %v246_v14  ;;  %v261_v27 = vmul.f32 0.75, %v245_v13  ;;  %v262_v29 = vmul.f32 0.75, %v246_v14 }
  0x18   : > { %v253_v21 = vmul.f32 %v251_v19, %v249_v15  ;;  %v263_v28 = vmul.f32 0.25, %v251_v19 }
  0x19   : > { %v254_v22 = vmul.f32 %v252_v20, %v250_v16  ;;  %v264_v30 = vmul.f32 0.25, %v252_v20 }
  0x1a   : > { %v255_v23 = vadd.f32 %v253_v21, %v247_v17  ;;  %v265_v33 = vadd.f32 %v263_v28, %v261_v27 }
  0x1b   : > { %v256_v24 = vadd.f32 %v254_v22, %v248_v18  ;;  %v266_v35 = vadd.f32 %v264_v30, %v262_v29 }
  0x1c   : > { %399 = vlog2.f32 %v255_v23  ;;  %v269_v25 = vsub.f32 1.0, %v255_v23 }
  0x1d   : > { %v270_v26 = vsub.f32 1.0, %v256_v24  ;;  %401 = vlog2.f32 %v256_v24 }
  0x1e   : > { %v271_v31 = vmul.f32 %v269_v25, %v269_v25 }
  0x1f   : > { %v272_v32 = vmul.f32 %v270_v26, %v270_v26 }
  0x20   : > { %v273_v38 = vsub.f32 0.0, %v271_v31 }
  0x21   : > { %v274_v40 = vsub.f32 0.0, %v272_v32 }
  0x22   : > { %v400_v34 = vpop.eup %399 }
  0x23   : > { %v402_v36 = vpop.eup %401  ;;  %v258_v37 = vmul.f32 0.6931472, %v400_v34 }
  0x24   : > { %v260_v39 = vmul.f32 0.6931472, %v402_v36 }
  0x25   : > { %v267_v41 = vmul.f32 %v265_v33, %v258_v37 }
  0x26   : > { %v268_v42 = vmul.f32 %v266_v35, %v260_v39 }
  0x27   : > { %v275_v44 = vmul.f32 %v273_v38, %v267_v41 }
  0x28   : > { %v276_v45 = vmul.f32 %v274_v40, %v268_v42 }
  0x29   : > { %v279_v46 = vadd.f32 %v277_v43, %v275_v44 }
  0x2a   : > { %282 = vst [vmem:[%s464_s19 + $0x8] sm:$0xff] %v276_v45 }
  0x2b   : > { %281 = vst [vmem:[%s464_s19] sm:$0xff] %v279_v46 }
  0x2c PF: > { %s12_s11 = sadd.s32 1, %s425_s11   ;;  %s489_s9 = smov %s421_s10 }
  0x2d   : > { %p9_p7 = scmp.ge.s32.totalorder %s12_s11, 4   ;;  %s490_s10 = smov %s492_s12 }
  0x2f   :  { %11 = sbr.rel (!%p9_p7) target bundleno = 2 (0x2), region = 65 }

</bundles_post_ra>
